<compile_context>
chip_gen: v5e
topology: v5e:2x2
jax: 0.10.0
libtpu: 0.0.40
codegen_flags: <defaults>
</compile_context>

<pallas_src>
import jax
import jax.numpy as jnp
from jax import lax
from jax.experimental import pallas as pl
from jax.experimental.pallas import tpu as pltpu


def _round_up(x, m):
    return (x + m - 1) // m * m


def _largest_divisor_leq(n, cap):
    """Largest divisor of n that is <= cap (at least 1)."""
    cap = max(1, min(cap, n))
    best = 1
    d = 1
    while d * d <= n:
        if n % d == 0:
            for dd in (d, n // d):
                if dd <= cap and dd > best:
                    best = dd
        d += 1
    return best


def _divisor_tiles(total, unit):
    """All multiples of `unit` dividing `total`, descending (total % unit == 0)."""
    q = total // unit
    divs = set()
    d = 1
    while d * d <= q:
        if q % d == 0:
            divs.add(d)
            divs.add(q // d)
        d += 1
    return sorted((d * unit for d in divs), reverse=True)


def _make_conv_stats_kernel(block_k, w_resident, use_scratch):
    """Phase 1: tiled matmul (im2col conv) + per-tile sum / sum-of-squares.

    lhs_ref:   (block_m, block_k)              im2col LHS tile (native dtype)
    w_ref:     (block_k|K_pad, block_n)        weights (resident slab if w_resident)
    o_ref:     (block_m, block_n)              conv output tile
    stats_ref: (1, 2, block_n)                 row 0 = sum, row 1 = sumsq
    scratch:   optional f32 accumulator (only when o_ref is not f32)
    """

    def kernel(lhs_ref, w_ref, o_ref, stats_ref, *scratch):
        k = pl.program_id(2)
        nk = pl.num_programs(2)
        acc_ref = scratch[0] if use_scratch else o_ref

        @pl.when(k == 0)
        def _():
            acc_ref[...] = jnp.zeros_like(acc_ref)

        if w_resident:
            k0 = pl.multiple_of(k * block_k, block_k)
            w_tile = w_ref[pl.ds(k0, block_k), :]
        else:
            w_tile = w_ref[...]

        acc_ref[...] += jnp.dot(lhs_ref[...], w_tile,
                                preferred_element_type=jnp.float32)

        @pl.when(k == nk - 1)
        def _():
            acc = acc_ref[...]
            if use_scratch:
                o_ref[...] = acc.astype(o_ref.dtype)
            s = jnp.sum(acc, axis=0, keepdims=True)          # (1, block_n)
            sq = jnp.sum(acc * acc, axis=0, keepdims=True)   # (1, block_n)
            stats_ref[...] = jnp.concatenate([s, sq], axis=0)[None]

    return kernel


def _bn_apply_kernel(conv_ref, scale_ref, shift_ref, o_ref):
    """Phase 2: lane-dense fused normalize  out = conv * scale + shift."""
    x = conv_ref[...].astype(jnp.float32)
    o_ref[...] = (x * scale_ref[...] + shift_ref[...]).astype(o_ref.dtype)


_TILE_VMEM_BUDGET = 28 * 1024 * 1024   # double-buffered working-set target
_VMEM_LIMIT_BYTES = 48 * 1024 * 1024   # safe on v5e/v6e (128 MiB) and v7x (64 MiB)


def bnconv2d(x_nchw, w_oihw, gamma, beta, *, stride=1, padding=0, dilation=1,
             groups=1, eps=1e-5, block_m=512):
    """Matches PyTorch BNConv2D.forward (NCHW in, NCHW out, BN batch stats)."""
    assert groups == 1  # TODO(synk): grouped convolution not implemented
    N, Cin, H, W = x_nchw.shape
    Cout, _, KH, KW = w_oihw.shape

    in_dtype = x_nchw.dtype
    in_bytes = in_dtype.itemsize
    # conv_out is stored in the input dtype (halves HBM for bf16); f32 inputs
    # accumulate directly into the output tile (no scratch).
    use_scratch = in_dtype != jnp.float32
    conv_dtype = in_dtype if jnp.issubdtype(in_dtype, jnp.floating) else jnp.float32
    conv_bytes = jnp.dtype(conv_dtype).itemsize
    out_dtype = conv_dtype
    out_bytes = jnp.dtype(out_dtype).itemsize
    sub_m = {4: 8, 2: 16, 1: 32}.get(in_bytes, 8)   # dtype-aware sublane tile

    # TODO(synk): the NCHW<->NHWC relayouts, pad and the materialized im2col
    # below are extra HBM passes (KH*KW-x read amplification for the input).
    # Folding im2col into the kernel needs manual shifted-window DMA that is
    # stride/dilation aware; keep the wrapper version for correctness and drop
    # the relayouts if the surrounding model runs NHWC natively.
    x = jnp.transpose(x_nchw, (0, 2, 3, 1))                  # NCHW -> NHWC
    if padding:
        x = jnp.pad(x, ((0, 0), (padding, padding), (padding, padding), (0, 0)))
    Hp, Wp = H + 2 * padding, W + 2 * padding
    OH = (Hp - dilation * (KH - 1) - 1) // stride + 1
    OW = (Wp - dilation * (KW - 1) - 1) // stride + 1
    M = N * OH * OW
    K = KH * KW * Cin

    patches = []
    for kh in range(KH):
        for kw in range(KW):
            h0 = kh * dilation
            w0 = kw * dilation
            patches.append(
                x[:, h0:h0 + (OH - 1) * stride + 1:stride,
                     w0:w0 + (OW - 1) * stride + 1:stride, :])
    lhs = jnp.stack(patches, axis=3).reshape(M, K)           # (M, KH*KW*Cin)
    rhs = jnp.transpose(w_oihw, (2, 3, 1, 0)).reshape(K, Cout).astype(in_dtype)

    # Pad to MXU / lane-friendly shapes (zeros contribute nothing).
    K_pad = _round_up(K, 128)
    C_pad = _round_up(Cout, 128)

    # ---- VMEM-aware tile selection --------------------------------------------
    block_n = 128 * _largest_divisor_leq(C_pad // 128, 512 // 128)  # <=512, | C_pad
    grid_n = C_pad // block_n

    block_m = _round_up(min(block_m, _round_up(M, sub_m)), sub_m)

    def _phase1_bytes(bm, bk, resident):
        w_buf = (K_pad if resident else bk) * block_n * in_bytes * 2
        b = (bm * bk * in_bytes * 2            # lhs (double-buffered)
             + w_buf                           # weights
             + bm * block_n * conv_bytes * 2   # conv out (double-buffered)
             + 2 * block_n * 4 * 2)            # stats
        if use_scratch:
            b += bm * block_n * 4
        return b

    def _pick_block_k(bm):
        for bk in _divisor_tiles(K_pad, 128):
            if bk > 2048:
                continue
            if _phase1_bytes(bm, bk, resident=False) <= _TILE_VMEM_BUDGET:
                return bk
        return None

    block_k = _pick_block_k(block_m)
    while block_k is None and block_m > sub_m:
        block_m = max(sub_m, _round_up(block_m // 2, sub_m))
        block_k = _pick_block_k(block_m)
    if block_k is None:
        block_k = 128
    grid_k = K_pad // block_k

    # Keep the full (K_pad, block_n) weight slab resident across K steps when it
    # fits, so weights are not re-streamed grid_m times from HBM.
    w_resident = grid_k > 1 and _phase1_bytes(
        block_m, block_k, resident=True) <= _TILE_VMEM_BUDGET

    M_pad = _round_up(M, block_m)
    grid_m = M_pad // block_m

    lhs = jnp.pad(lhs, ((0, M_pad - M), (0, K_pad - K)))
    rhs = jnp.pad(rhs, ((0, K_pad - K), (0, C_pad - Cout)))

    w_spec = (pl.BlockSpec((K_pad, block_n), lambda i, j, k: (0, j)) if w_resident
              else pl.BlockSpec((block_k, block_n), lambda i, j, k: (k, j)))
    scratch_shapes = ([pltpu.VMEM((block_m, block_n), jnp.float32)]
                      if use_scratch else [])

    # ---- Phase 1: conv + per-tile partial statistics ---------------------------
    conv_out, stats = pl.pallas_call(
        _make_conv_stats_kernel(block_k, w_resident, use_scratch),
        out_shape=(jax.ShapeDtypeStruct((M_pad, C_pad), conv_dtype),
                   jax.ShapeDtypeStruct((grid_m, 2, C_pad), jnp.float32)),
        grid_spec=pltpu.PrefetchScalarGridSpec(
            num_scalar_prefetch=0,
            grid=(grid_m, grid_n, grid_k),
            in_specs=[pl.BlockSpec((block_m, block_k), lambda i, j, k: (i, k)),
                      w_spec],
            out_specs=(pl.BlockSpec((block_m, block_n), lambda i, j, k: (i, j)),
                       pl.BlockSpec((1, 2, block_n), lambda i, j, k: (i, 0, j))),
            scratch_shapes=scratch_shapes),
        compiler_params=pltpu.CompilerParams(
            dimension_semantics=("parallel", "parallel", "arbitrary"),
            vmem_limit_bytes=_VMEM_LIMIT_BYTES),
    )(lhs, rhs)

    # ---- Global batch statistics (tiny per-channel reduction, plain JAX) -------
    # TODO(synk): E[x^2]-mean^2 can cancel for |mean| >> std; a Welford-style
    # merge of per-tile (count, mean, M2) would be more robust numerically.
    sums = jnp.sum(stats[:, 0, :], axis=0)                   # (C_pad,)
    sumsq = jnp.sum(stats[:, 1, :], axis=0)                  # (C_pad,)
    inv_m = 1.0 / M                                          # padded rows are 0
    mean = sums * inv_m
    var = jnp.maximum(sumsq * inv_m - mean * mean, 0.0)
    gamma_p = jnp.pad(gamma.astype(jnp.float32), (0, C_pad - Cout))
    beta_p = jnp.pad(beta.astype(jnp.float32), (0, C_pad - Cout))
    scale = gamma_p * lax.rsqrt(var + eps)
    shift = beta_p - mean * scale

    # ---- Phase 2: normalize with the global stats (big decoupled tiles) --------
    row_bytes = C_pad * 2 * (conv_bytes + out_bytes)         # double-buffered in+out
    cap_rows = max(sub_m, min(4096, _TILE_VMEM_BUDGET // row_bytes))
    q = M_pad // sub_m
    block_m2 = sub_m * _largest_divisor_leq(q, max(1, cap_rows // sub_m))
    grid_m2 = M_pad // block_m2

    out_flat = pl.pallas_call(
        _bn_apply_kernel,
        out_shape=jax.ShapeDtypeStruct((M_pad, C_pad), out_dtype),
        grid_spec=pltpu.PrefetchScalarGridSpec(
            num_scalar_prefetch=0,
            grid=(grid_m2,),
            in_specs=[pl.BlockSpec((block_m2, C_pad), lambda i: (i, 0)),
                      pl.BlockSpec((1, C_pad), lambda i: (0, 0)),
                      pl.BlockSpec((1, C_pad), lambda i: (0, 0))],
            out_specs=pl.BlockSpec((block_m2, C_pad), lambda i: (i, 0))),
        compiler_params=pltpu.CompilerParams(
            dimension_semantics=("parallel",),
            vmem_limit_bytes=_VMEM_LIMIT_BYTES),
    )(conv_out, scale.reshape(1, C_pad), shift.reshape(1, C_pad))

    out = out_flat[:M, :Cout].reshape(N, OH, OW, Cout)
    return jnp.transpose(out, (0, 3, 1, 2))                  # NHWC -> NCHW


def _reference(x_nchw, w_oihw, gamma, beta, *, stride, padding, dilation, eps):
    conv = lax.conv_general_dilated(
        x_nchw, w_oihw,
        window_strides=(stride, stride),
        padding=[(padding, padding), (padding, padding)],
        rhs_dilation=(dilation, dilation),
        dimension_numbers=("NCHW", "OIHW", "NCHW"),
        precision=lax.Precision.HIGHEST)
    mean = conv.mean(axis=(0, 2, 3), keepdims=True)
    var = ((conv - mean) ** 2).mean(axis=(0, 2, 3), keepdims=True)
    return ((conv - mean) * lax.rsqrt(var + eps)
            * gamma.reshape(1, -1, 1, 1) + beta.reshape(1, -1, 1, 1))


if __name__ == "__main__":
    # Shapes consistent with BNConv2D(in_channels=4, out_channels=8,
    # kernel_size=3, stride=1, padding=1).
    N, Cin, H, W = 2, 4, 16, 16
    Cout, Ksz = 8, 3
    stride, padding, dilation = 1, 1, 1
    eps = 1e-5

    key = jax.random.PRNGKey(0)
    kx, kw = jax.random.split(key)
    x = jax.random.normal(kx, (N, Cin, H, W), dtype=jnp.float32)

    # PyTorch-default-like init: uniform conv weights, BN gamma=1, beta=0.
    fan_in = Cin * Ksz * Ksz
    bound = (1.0 / fan_in) ** 0.5
    w = jax.random.uniform(kw, (Cout, Cin, Ksz, Ksz), dtype=jnp.float32,
                           minval=-bound, maxval=bound)
    gamma = jnp.ones((Cout,), jnp.float32)
    beta = jnp.zeros((Cout,), jnp.float32)

    out = bnconv2d(x, w, gamma, beta, stride=stride, padding=padding,
                   dilation=dilation, eps=eps)
    out = jax.block_until_ready(out)

    ref = _reference(x, w, gamma, beta, stride=stride, padding=padding,
                     dilation=dilation, eps=eps)
    assert out.shape == ref.shape, (out.shape, ref.shape)
    assert jnp.allclose(out, ref, atol=5e-3, rtol=5e-3), \
        float(jnp.max(jnp.abs(out - ref)))

    print("KERNEL_OK")
</pallas_src>

<mosaic_0001>
module attributes {stable_mosaic.version = 11 : i64} {
  func.func @kernel(%arg0: i32, %arg1: i32, %arg2: i32, %arg3: memref<512x128xf32, #tpu.memory_space<vmem>>, %arg4: memref<128x128xf32, #tpu.memory_space<vmem>>, %arg5: memref<512x128xf32, #tpu.memory_space<vmem>>, %arg6: memref<1x2x128xf32, #tpu.memory_space<vmem>>) attributes {dimension_semantics = [#tpu.dimension_semantics<parallel>, #tpu.dimension_semantics<parallel>, #tpu.dimension_semantics<arbitrary>], iteration_bounds = array<i64: 1, 1, 1>, scalar_prefetch = 0 : i64, scratch_operands = 0 : i64, tpu.core_type = #tpu.core_type<tc>, window_params = [{transform_indices = @transform_0, window_bounds = array<i64: 512, 128>}, {transform_indices = @transform_1, window_bounds = array<i64: 128, 128>}, {transform_indices = @transform_2, window_bounds = array<i64: 512, 128>}, {transform_indices = @transform_3, window_bounds = array<i64: 1, 2, 128>}]} {
    %c0_i32 = arith.constant 0 : i32
    %0 = arith.cmpi eq, %arg2, %c0_i32 : i32
    %1 = arith.extui %0 : i1 to i32
    %c0_i32_0 = arith.constant 0 : i32
    %2 = arith.cmpi ne, %1, %c0_i32_0 : i32
    scf.if %2 {
      %cst_10 = arith.constant 0.000000e+00 : f32
      %12 = vector.broadcast %cst_10 : f32 to vector<512x128xf32>
      %c0_11 = arith.constant 0 : index
      %c0_12 = arith.constant 0 : index
      %13 = vector.load %arg5[%c0_11, %c0_12] : memref<512x128xf32, #tpu.memory_space<vmem>>, vector<512x128xf32>
      tpu.vector_store %arg5[%c0_11, %c0_12], %12 {strides = array<i32>} : memref<512x128xf32, #tpu.memory_space<vmem>>, vector<512x128xf32>,
    } else {
    }
    %c0 = arith.constant 0 : index
    %c0_1 = arith.constant 0 : index
    %3 = vector.load %arg4[%c0, %c0_1] : memref<128x128xf32, #tpu.memory_space<vmem>>, vector<128x128xf32>
    %c0_2 = arith.constant 0 : index
    %c0_3 = arith.constant 0 : index
    %4 = vector.load %arg5[%c0_2, %c0_3] : memref<512x128xf32, #tpu.memory_space<vmem>>, vector<512x128xf32>
    %c0_4 = arith.constant 0 : index
    %c0_5 = arith.constant 0 : index
    %5 = vector.load %arg3[%c0_4, %c0_5] : memref<512x128xf32, #tpu.memory_space<vmem>>, vector<512x128xf32>
    %cst = arith.constant dense<0.000000e+00> : vector<512x128xf32>
    %6 = tpu.matmul %5, %3, %cst {dimension_numbers = #tpu.dot_dimension_numbers<[1], [0], [0], [1], [0, 0, 1, 1], [], []>} : vector<512x128xf32>, vector<128x128xf32>, vector<512x128xf32> -> vector<512x128xf32>
    %7 = arith.addf %4, %6 : vector<512x128xf32>
    %c0_6 = arith.constant 0 : index
    %c0_7 = arith.constant 0 : index
    %8 = vector.load %arg5[%c0_6, %c0_7] : memref<512x128xf32, #tpu.memory_space<vmem>>, vector<512x128xf32>
    tpu.vector_store %arg5[%c0_6, %c0_7], %7 {strides = array<i32>} : memref<512x128xf32, #tpu.memory_space<vmem>>, vector<512x128xf32>,
    %c0_i32_8 = arith.constant 0 : i32
    %9 = arith.cmpi eq, %arg2, %c0_i32_8 : i32
    %10 = arith.extui %9 : i1 to i32
    %c0_i32_9 = arith.constant 0 : i32
    %11 = arith.cmpi ne, %10, %c0_i32_9 : i32
    scf.if %11 {
      %c0_10 = arith.constant 0 : index
      %c0_11 = arith.constant 0 : index
      %12 = vector.load %arg5[%c0_10, %c0_11] : memref<512x128xf32, #tpu.memory_space<vmem>>, vector<512x128xf32>
      %cst_12 = arith.constant dense<0.000000e+00> : vector<128xf32>
      %13 = vector.multi_reduction <add>, %12, %cst_12 [0] : vector<512x128xf32> to vector<128xf32>
      %14 = vector.shape_cast %13 : vector<128xf32> to vector<1x128xf32>
      %15 = arith.mulf %12, %12 : vector<512x128xf32>
      %cst_13 = arith.constant dense<0.000000e+00> : vector<128xf32>
      %16 = vector.multi_reduction <add>, %15, %cst_13 [0] : vector<512x128xf32> to vector<128xf32>
      %17 = vector.shape_cast %16 : vector<128xf32> to vector<1x128xf32>
      %18 = tpu.concatenate %14, %17 in 0 : vector<1x128xf32>, vector<1x128xf32> -> vector<2x128xf32>
      %19 = vector.shape_cast %18 : vector<2x128xf32> to vector<1x2x128xf32>
      %c0_14 = arith.constant 0 : index
      %c0_15 = arith.constant 0 : index
      %c0_16 = arith.constant 0 : index
      %20 = vector.load %arg6[%c0_14, %c0_15, %c0_16] : memref<1x2x128xf32, #tpu.memory_space<vmem>>, vector<1x2x128xf32>
      tpu.vector_store %arg6[%c0_14, %c0_15, %c0_16], %19 {strides = array<i32>} : memref<1x2x128xf32, #tpu.memory_space<vmem>>, vector<1x2x128xf32>,
    } else {
    }
    return
  }
  func.func @transform_0(%arg0: i32, %arg1: i32, %arg2: i32) -> (i32, i32) {
    %c0_i32 = arith.constant 0 : i32
    return %arg0, %arg2 : i32, i32
  }
  func.func @transform_1(%arg0: i32, %arg1: i32, %arg2: i32) -> (i32, i32) {
    %c0_i32 = arith.constant 0 : i32
    return %arg2, %arg1 : i32, i32
  }
  func.func @transform_2(%arg0: i32, %arg1: i32, %arg2: i32) -> (i32, i32) {
    %c0_i32 = arith.constant 0 : i32
    return %arg0, %arg1 : i32, i32
  }
  func.func @transform_3(%arg0: i32, %arg1: i32, %arg2: i32) -> (i32, i32, i32) {
    %c0_i32 = arith.constant 0 : i32
    %c0_i32_0 = arith.constant 0 : i32
    return %arg0, %c0_i32, %arg1 : i32, i32, i32
  }
}

</mosaic_0001>

<bundles_post_ra>
// kernel: tpu_custom_call.1
= control target key start
LH: loop header
LB: loop body
LE: loop exit
PB: predicated region body
PF: predicated region fallthrough
CT: control target
= control target key end

     0   :  { %9 = vsyncpa [#allocation3], 0  ;;  %s1344_s0 = inlined_call_operand.hbm [shape: f32[512,128], index: 0, kind: input, shape index: {}]   ;;  %s1345_s1 = inlined_call_operand.hbm [shape: f32[128,128], index: 1, kind: input, shape index: {}]   ;;  %s1346_s2 = inlined_call_operand.hbm [shape: f32[512,128], index: 2, kind: output, shape index: {0}]   ;;  %s1347_s3 = inlined_call_operand.hbm [shape: f32[1,2,128], index: 3, kind: output, shape index: {1}]  }
   0x1   :  { %10 = vsyncpa [#allocation6], 0 }
   0x2   :  { %11 = vsyncpa [#allocation4], 0 }
   0x3   :  { %12 = vsyncpa [#allocation9], 0  ;;  %s17_s14 = sshll.u32 %s1344_s0, 4  ;;  %s1063_s15 = smov [#allocation2]   ;;  %s18_s14 = int_to_ptr.hbm [resolvable:$true] %s17_s14 }
   0x4   :  { %s19_s16 = sshll.u32 %s1063_s15, 4  ;;  %s30_s19 = sshll.u32 %s1345_s1, 4  ;;  %s20_s16 = int_to_ptr.vmem [resolvable:$true] %s19_s16  ;;  %s31_s19 = int_to_ptr.hbm [resolvable:$true] %s30_s19 }
   0x5   :  { %s1064_s20 = smov 128   ;;  %s1065_s21 = smov 8  }
   0x6   :  { %25 = dma.hbm_to_vmem [thread:$0]  %s18_s14, 8192, %s20_s16, [#allocation3], %s1064_s20, %s1064_s20, %s1065_s21  }
   0x7   :  { %s1066_s22 = smov [#allocation5]  }
   0x8   :  { %s32_s23 = sshll.u32 %s1066_s22, 4  ;;  %s33_s23 = int_to_ptr.vmem [resolvable:$true] %s32_s23 }
   0x9   :  { %38 = dma.hbm_to_vmem [thread:$0]  %s31_s19, 2048, %s33_s23, [#allocation6], %s1064_s20, %s1064_s20, %s1065_s21  }
   0xa   :  { %1055 = dma.done.wait [#allocation3], 8192  }
   0xb   :  { %1056 = vsyncadd [#allocation3], 4294959104 }
   0xc   :  { %1057 = dma.done.wait [#allocation6], 2048  }
   0xd   :  { %1058 = vsyncadd [#allocation6], 4294965248  ;;  %v130_v0 = vld [vmem:[#allocation5 + $0x78] sm:$0xff]  ;;  %v129_v1 = vld [vmem:[#allocation5 + $0x70] sm:$0xff]  ;;  %s1067_s0 = smov [#allocation7]   ;;  %s874_s26 = sshll.u32 %s1346_s2, 4  ;;  %s875_s26 = int_to_ptr.hbm [resolvable:$true] %s874_s26 }
   0xe   :  { %259 = vmatpush.msra.mxu0 %v130_v0  ;;  %904 = vmatpush.msra.mxu1 %v130_v0  ;;  %v128_v2 = vld [vmem:[#allocation5 + $0x68] sm:$0xff]  ;;  %v127_v3 = vld [vmem:[#allocation5 + $0x60] sm:$0xff]  ;;  %v126_v4 = vld [vmem:[#allocation5 + $0x58] sm:$0xff]  ;;  %s872_s1 = sshll.u32 %s1067_s0, 4  ;;  %s1068_s2 = smov [#allocation8]   ;;  %vm865_vm0 = vcmask 1040384   ;;  %s873_s1 = int_to_ptr.vmem [resolvable:$true] %s872_s1 }
   0xf   :  { %905 = vmatpush.msra.mxu2 %v130_v0  ;;  %906 = vmatpush.msra.mxu3 %v130_v0  ;;  %v125_v5 = vld [vmem:[#allocation5 + $0x50] sm:$0xff]  ;;  %v124_v6 = vld [vmem:[#allocation5 + $0x48] sm:$0xff]  ;;  %v123_v7 = vld [vmem:[#allocation5 + $0x40] sm:$0xff]  ;;  %s886_s27 = sshll.u32 %s1068_s2, 4  ;;  %s888_s30 = sshll.u32 %s1347_s3, 4  ;;  %s887_s27 = int_to_ptr.vmem [resolvable:$true] %s886_s27  ;;  %s889_s30 = int_to_ptr.hbm [resolvable:$true] %s888_s30 }
  0x10   :  { %260 = vmatpush.msra.mxu0 %v129_v1  ;;  %907 = vmatpush.msra.mxu1 %v129_v1  ;;  %v122_v8 = vld [vmem:[#allocation5 + $0x38] sm:$0xff]  ;;  %v121_v9 = vld [vmem:[#allocation5 + $0x30] sm:$0xff]  ;;  %v120_v10 = vld [vmem:[#allocation5 + $0x28] sm:$0xff] }
  0x11   :  { %908 = vmatpush.msra.mxu2 %v129_v1  ;;  %909 = vmatpush.msra.mxu3 %v129_v1  ;;  %v119_v11 = vld [vmem:[#allocation5 + $0x20] sm:$0xff]  ;;  %v118_v12 = vld [vmem:[#allocation5 + $0x18] sm:$0xff]  ;;  %v117_v13 = vld [vmem:[#allocation5 + $0x10] sm:$0xff] }
  0x12   :  { %261 = vmatpush.msra.mxu0 %v128_v2  ;;  %910 = vmatpush.msra.mxu1 %v128_v2  ;;  %v116_v14 = vld [vmem:[#allocation5 + $0x8] sm:$0xff]  ;;  %v115_v15 = vld [vmem:[#allocation5] sm:$0xff]  ;;  %v197_v20 = vld [vmem:[#allocation2 + $0x10] sm:$0xff] }
  0x13   :  { %911 = vmatpush.msra.mxu2 %v128_v2  ;;  %912 = vmatpush.msra.mxu3 %v128_v2  ;;  %v195_v16 = vld [vmem:[#allocation2] sm:$0xff]  ;;  %v196_v18 = vld [vmem:[#allocation2 + $0x8] sm:$0xff]  ;;  %v213_v21 = vld [vmem:[#allocation2 + $0x90] sm:$0xff] }
  0x14   :  { %262 = vmatpush.msra.mxu0 %v127_v3  ;;  %913 = vmatpush.msra.mxu1 %v127_v3  ;;  %v211_v17 = vld [vmem:[#allocation2 + $0x80] sm:$0xff]  ;;  %v212_v19 = vld [vmem:[#allocation2 + $0x88] sm:$0xff]  ;;  %v198_v22 = vld [vmem:[#allocation2 + $0x18] sm:$0xff] }
  0x15   :  { %914 = vmatpush.msra.mxu2 %v127_v3  ;;  %915 = vmatpush.msra.mxu3 %v127_v3  ;;  %v214_v23 = vld [vmem:[#allocation2 + $0x98] sm:$0xff]  ;;  %v227_v24 = vld [vmem:[#allocation2 + $0x100] sm:$0xff]  ;;  %v228_v27 = vld [vmem:[#allocation2 + $0x108] sm:$0xff] }
  0x16   :  { %263 = vmatpush.msra.mxu0 %v126_v4  ;;  %916 = vmatpush.msra.mxu1 %v126_v4  ;;  %v199_v25 = vld [vmem:[#allocation2 + $0x20] sm:$0xff]  ;;  %v200_v28 = vld [vmem:[#allocation2 + $0x28] sm:$0xff]  ;;  %v229_v30 = vld [vmem:[#allocation2 + $0x110] sm:$0xff] }
  0x17   :  { %917 = vmatpush.msra.mxu2 %v126_v4  ;;  %918 = vmatpush.msra.mxu3 %v126_v4  ;;  %v215_v26 = vld [vmem:[#allocation2 + $0xa0] sm:$0xff]  ;;  %v216_v29 = vld [vmem:[#allocation2 + $0xa8] sm:$0xff]  ;;  %v201_v31 = vld [vmem:[#allocation2 + $0x30] sm:$0xff] }
  0x18   :  { %264 = vmatpush.msra.mxu0 %v125_v5  ;;  %919 = vmatpush.msra.mxu1 %v125_v5  ;;  %v217_v32 = vld [vmem:[#allocation2 + $0xb0] sm:$0xff]  ;;  %v230_v33 = vld [vmem:[#allocation2 + $0x118] sm:$0xff]  ;;  %v243_v34 = vld [vmem:[#allocation2 + $0x180] sm:$0xff] }
  0x19   :  { %920 = vmatpush.msra.mxu2 %v125_v5  ;;  %921 = vmatpush.msra.mxu3 %v125_v5  ;;  %v202_v35 = vld [vmem:[#allocation2 + $0x38] sm:$0xff]  ;;  %v231_v37 = vld [vmem:[#allocation2 + $0x120] sm:$0xff]  ;;  %v244_v38 = vld [vmem:[#allocation2 + $0x188] sm:$0xff] }
  0x1a   :  { %265 = vmatpush.msra.mxu0 %v124_v6  ;;  %922 = vmatpush.msra.mxu1 %v124_v6  ;;  %v218_v36 = vld [vmem:[#allocation2 + $0xb8] sm:$0xff]  ;;  %v203_v39 = vld [vmem:[#allocation2 + $0x40] sm:$0xff]  ;;  %v232_v41 = vld [vmem:[#allocation2 + $0x128] sm:$0xff] }
  0x1b   :  { %923 = vmatpush.msra.mxu2 %v124_v6  ;;  %924 = vmatpush.msra.mxu3 %v124_v6  ;;  %v219_v40 = vld [vmem:[#allocation2 + $0xc0] sm:$0xff]  ;;  %v245_v42 = vld [vmem:[#allocation2 + $0x190] sm:$0xff]  ;;  %v204_v43 = vld [vmem:[#allocation2 + $0x48] sm:$0xff] }
  0x1c   :  { %266 = vmatpush.msra.mxu0 %v123_v7  ;;  %925 = vmatpush.msra.mxu1 %v123_v7  ;;  %v220_v44 = vld [vmem:[#allocation2 + $0xc8] sm:$0xff]  ;;  %v233_v45 = vld [vmem:[#allocation2 + $0x130] sm:$0xff]  ;;  %v246_v46 = vld [vmem:[#allocation2 + $0x198] sm:$0xff] }
  0x1d   :  { %926 = vmatpush.msra.mxu2 %v123_v7  ;;  %927 = vmatpush.msra.mxu3 %v123_v7  ;;  %v205_v47 = vld [vmem:[#allocation2 + $0x50] sm:$0xff]  ;;  %v234_v49 = vld [vmem:[#allocation2 + $0x138] sm:$0xff]  ;;  %v247_v50 = vld [vmem:[#allocation2 + $0x1a0] sm:$0xff] }
  0x1e   :  { %267 = vmatpush.msra.mxu0 %v122_v8  ;;  %928 = vmatpush.msra.mxu1 %v122_v8  ;;  %v221_v48 = vld [vmem:[#allocation2 + $0xd0] sm:$0xff]  ;;  %v206_v51 = vld [vmem:[#allocation2 + $0x58] sm:$0xff]  ;;  %v235_v53 = vld [vmem:[#allocation2 + $0x140] sm:$0xff] }
  0x1f   :  { %929 = vmatpush.msra.mxu2 %v122_v8  ;;  %930 = vmatpush.msra.mxu3 %v122_v8  ;;  %v222_v52 = vld [vmem:[#allocation2 + $0xd8] sm:$0xff]  ;;  %v248_v54 = vld [vmem:[#allocation2 + $0x1a8] sm:$0xff]  ;;  %v207_v55 = vld [vmem:[#allocation2 + $0x60] sm:$0xff] }
  0x20   :  { %268 = vmatpush.msra.mxu0 %v121_v9  ;;  %931 = vmatpush.msra.mxu1 %v121_v9  ;;  %v223_v56 = vld [vmem:[#allocation2 + $0xe0] sm:$0xff]  ;;  %v236_v57 = vld [vmem:[#allocation2 + $0x148] sm:$0xff]  ;;  %v249_v58 = vld [vmem:[#allocation2 + $0x1b0] sm:$0xff] }
  0x21   :  { %932 = vmatpush.msra.mxu2 %v121_v9  ;;  %933 = vmatpush.msra.mxu3 %v121_v9  ;;  %v208_v59 = vld [vmem:[#allocation2 + $0x68] sm:$0xff]  ;;  %v237_v61 = vld [vmem:[#allocation2 + $0x150] sm:$0xff]  ;;  %v250_v62 = vld [vmem:[#allocation2 + $0x1b8] sm:$0xff] }
  0x22   :  { %269 = vmatpush.msra.mxu0 %v120_v10  ;;  %934 = vmatpush.msra.mxu1 %v120_v10  ;;  %v224_v60 = vld [vmem:[#allocation2 + $0xe8] sm:$0xff]  ;;  %v209_v63 = vld [vmem:[#allocation2 + $0x70] sm:$0xff]  ;;  %v238_v1 = vld [vmem:[#allocation2 + $0x158] sm:$0xff] }
  0x23   :  { %935 = vmatpush.msra.mxu2 %v120_v10  ;;  %936 = vmatpush.msra.mxu3 %v120_v10  ;;  %v225_v0 = vld [vmem:[#allocation2 + $0xf0] sm:$0xff]  ;;  %v251_v2 = vld [vmem:[#allocation2 + $0x1c0] sm:$0xff]  ;;  %v210_v3 = vld [vmem:[#allocation2 + $0x78] sm:$0xff] }
  0x24   :  { %270 = vmatpush.msra.mxu0 %v119_v11  ;;  %937 = vmatpush.msra.mxu1 %v119_v11  ;;  %v226_v4 = vld [vmem:[#allocation2 + $0xf8] sm:$0xff]  ;;  %v239_v5 = vld [vmem:[#allocation2 + $0x160] sm:$0xff]  ;;  %v252_v6 = vld [vmem:[#allocation2 + $0x1c8] sm:$0xff] }
  0x25   :  { %938 = vmatpush.msra.mxu2 %v119_v11  ;;  %939 = vmatpush.msra.mxu3 %v119_v11  ;;  %v240_v9 = vld [vmem:[#allocation2 + $0x168] sm:$0xff]  ;;  %v253_v10 = vld [vmem:[#allocation2 + $0x1d0] sm:$0xff] }
  0x26   :  { %271 = vmatpush.msra.mxu0 %v118_v12  ;;  %940 = vmatpush.msra.mxu1 %v118_v12 }
  0x27   :  { %941 = vmatpush.msra.mxu2 %v118_v12  ;;  %942 = vmatpush.msra.mxu3 %v118_v12 }
  0x28   :  { %272 = vmatpush.msra.mxu0 %v117_v13  ;;  %943 = vmatpush.msra.mxu1 %v117_v13 }
  0x29   :  { %944 = vmatpush.msra.mxu2 %v117_v13  ;;  %945 = vmatpush.msra.mxu3 %v117_v13 }
  0x2a   :  { %273 = vmatpush.msra.mxu0 %v116_v14  ;;  %946 = vmatpush.msra.mxu1 %v116_v14 }
  0x2b   :  { %947 = vmatpush.msra.mxu2 %v116_v14  ;;  %948 = vmatpush.msra.mxu3 %v116_v14 }
  0x2c   :  { %274 = vmatpush.msra.mxu0 %v115_v15  ;;  %949 = vmatpush.msra.mxu1 %v115_v15 }
  0x2d   :  { %275 = vmatmul.f32.vlgmr.msra.gmra.mxu0 %v195_v16  ;;  %323 = vmatmul.f32.vlgmr.msra.gmra.mxu1 %v211_v17  ;;  %v241_v16 = vld [vmem:[#allocation2 + $0x170] sm:$0xff]  ;;  %v254_v17 = vld [vmem:[#allocation2 + $0x1d8] sm:$0xff] }
  0x2e   :  { %950 = vmatpush.msra.mxu2 %v115_v15  ;;  %951 = vmatpush.msra.mxu3 %v115_v15 }
  0x2f   :  { %371 = vmatmul.f32.vlgmr.msra.gmra.mxu2 %v227_v24  ;;  %419 = vmatmul.f32.vlgmr.msra.gmra.mxu3 %v243_v34  ;;  %v255_v24 = vld [vmem:[#allocation2 + $0x1e0] sm:$0xff] }
  0x35   :  { %278 = vmatmul.f32.gmra.mxu0 %v196_v18  ;;  %326 = vmatmul.f32.gmra.mxu1 %v212_v19 }
  0x37   :  { %374 = vmatmul.f32.gmra.mxu2 %v228_v27  ;;  %422 = vmatmul.f32.gmra.mxu3 %v244_v38 }
  0x3d   :  { %281 = vmatmul.f32.gmra.mxu0 %v197_v20  ;;  %329 = vmatmul.f32.gmra.mxu1 %v213_v21 }
  0x3f   :  { %377 = vmatmul.f32.gmra.mxu2 %v229_v30  ;;  %425 = vmatmul.f32.gmra.mxu3 %v245_v42  ;;  %v256_v30 = vld [vmem:[#allocation2 + $0x1e8] sm:$0xff]  ;;  %v258_v42 = vld [vmem:[#allocation2 + $0x1f8] sm:$0xff] }
  0x45   :  { %284 = vmatmul.f32.gmra.mxu0 %v198_v22  ;;  %332 = vmatmul.f32.gmra.mxu1 %v214_v23  ;;  %v242_v23 = vld [vmem:[#allocation2 + $0x178] sm:$0xff] }
  0x47   :  { %380 = vmatmul.f32.gmra.mxu2 %v230_v33  ;;  %428 = vmatmul.f32.gmra.mxu3 %v246_v46 }
  0x4d   :  { %287 = vmatmul.f32.gmra.mxu0 %v199_v25  ;;  %335 = vmatmul.f32.gmra.mxu1 %v215_v26 }
  0x4f   :  { %383 = vmatmul.f32.gmra.mxu2 %v231_v37  ;;  %431 = vmatmul.f32.gmra.mxu3 %v247_v50  ;;  %v257_v37 = vld [vmem:[#allocation2 + $0x1f0] sm:$0xff] }
  0x55   :  { %290 = vmatmul.f32.gmra.mxu0 %v200_v28  ;;  %338 = vmatmul.f32.gmra.mxu1 %v216_v29 }
  0x57   :  { %386 = vmatmul.f32.gmra.mxu2 %v232_v41  ;;  %434 = vmatmul.f32.gmra.mxu3 %v248_v54 }
  0x5d   :  { %293 = vmatmul.f32.gmra.mxu0 %v201_v31  ;;  %341 = vmatmul.f32.gmra.mxu1 %v217_v32 }
  0x5f   :  { %389 = vmatmul.f32.gmra.mxu2 %v233_v45  ;;  %437 = vmatmul.f32.gmra.mxu3 %v249_v58 }
  0x65   :  { %296 = vmatmul.f32.gmra.mxu0 %v202_v35  ;;  %344 = vmatmul.f32.gmra.mxu1 %v218_v36 }
  0x67   :  { %392 = vmatmul.f32.gmra.mxu2 %v234_v49  ;;  %440 = vmatmul.f32.gmra.mxu3 %v250_v62 }
  0x6d   :  { %299 = vmatmul.f32.gmra.mxu0 %v203_v39  ;;  %347 = vmatmul.f32.gmra.mxu1 %v219_v40 }
  0x6f   :  { %395 = vmatmul.f32.gmra.mxu2 %v235_v53  ;;  %443 = vmatmul.f32.gmra.mxu3 %v251_v2 }
  0x75   :  { %302 = vmatmul.f32.gmra.mxu0 %v204_v43  ;;  %350 = vmatmul.f32.gmra.mxu1 %v220_v44 }
  0x77   :  { %398 = vmatmul.f32.gmra.mxu2 %v236_v57  ;;  %446 = vmatmul.f32.gmra.mxu3 %v252_v6 }
  0x7d   :  { %305 = vmatmul.f32.gmra.mxu0 %v205_v47  ;;  %353 = vmatmul.f32.gmra.mxu1 %v221_v48 }
  0x7f   :  { %401 = vmatmul.f32.gmra.mxu2 %v237_v61  ;;  %449 = vmatmul.f32.gmra.mxu3 %v253_v10 }
  0x85   :  { %308 = vmatmul.f32.gmra.mxu0 %v206_v51  ;;  %356 = vmatmul.f32.gmra.mxu1 %v222_v52 }
  0x87   :  { %404 = vmatmul.f32.gmra.mxu2 %v238_v1  ;;  %452 = vmatmul.f32.gmra.mxu3 %v254_v17 }
  0x8d   :  { %311 = vmatmul.f32.gmra.mxu0 %v207_v55  ;;  %359 = vmatmul.f32.gmra.mxu1 %v223_v56 }
  0x8f   :  { %407 = vmatmul.f32.gmra.mxu2 %v239_v5  ;;  %455 = vmatmul.f32.gmra.mxu3 %v255_v24 }
  0x95   :  { %314 = vmatmul.f32.gmra.mxu0 %v208_v59  ;;  %362 = vmatmul.f32.gmra.mxu1 %v224_v60 }
  0x97   :  { %410 = vmatmul.f32.gmra.mxu2 %v240_v9  ;;  %458 = vmatmul.f32.gmra.mxu3 %v256_v30 }
  0x9d   :  { %317 = vmatmul.f32.gmra.mxu0 %v209_v63  ;;  %365 = vmatmul.f32.gmra.mxu1 %v225_v0 }
  0x9f   :  { %413 = vmatmul.f32.gmra.mxu2 %v241_v16  ;;  %461 = vmatmul.f32.gmra.mxu3 %v257_v37 }
  0xa5   :  { %320 = vmatmul.f32.gmra.mxu0 %v210_v3  ;;  %368 = vmatmul.f32.gmra.mxu1 %v226_v4 }
  0xa7   :  { %416 = vmatmul.f32.gmra.mxu2 %v242_v23  ;;  %464 = vmatmul.f32.gmra.mxu3 %v258_v42 }
  0xaa   :  { %v276_v7 = vpop.f32.mrf.mxu0  ;;  %v1101_v8 = vpop.f32.mrf.mxu1 }
  0xab   :  { %532 = vst [vmem:[#allocation7] sm:$0xff] %v276_v7  ;;  %v732_v13 = vmul.f32 %v276_v7, %v276_v7 }
  0xac   :  { %548 = vst [vmem:[#allocation7 + $0x80] sm:$0xff] %v1101_v8 }
  0xb2   :  { %v279_v11 = vpop.f32.mrf.mxu0  ;;  %v1104_v12 = vpop.f32.mrf.mxu1 }
  0xb3   :  { %533 = vst [vmem:[#allocation7 + $0x8] sm:$0xff] %v279_v11  ;;  %v663_v14 = vadd.f32 %v279_v11, %v276_v7  ;;  %v733_v15 = vmul.f32 %v279_v11, %v279_v11  ;;  %v1115_v34 = vpop.f32.mrf.mxu2  ;;  %v1142_v49 = vpop.f32.mrf.mxu3 }
  0xb4   :  { %549 = vst [vmem:[#allocation7 + $0x88] sm:$0xff] %v1104_v12 }
  0xb5   :  { %v796_v18 = vadd.f32 %v733_v15, %v732_v13  ;;  %564 = vst [vmem:[#allocation7 + $0x100] sm:$0xff] %v1115_v34 }
  0xb6   :  { %580 = vst [vmem:[#allocation7 + $0x180] sm:$0xff] %v1142_v49 }
  0xba   :  { %v282_v19 = vpop.f32.mrf.mxu0  ;;  %v1107_v20 = vpop.f32.mrf.mxu1 }
  0xbb   :  { %534 = vst [vmem:[#allocation7 + $0x10] sm:$0xff] %v282_v19  ;;  %v664_v21 = vadd.f32 %v663_v14, %v282_v19  ;;  %v734_v22 = vmul.f32 %v282_v19, %v282_v19  ;;  %v1127_v41 = vpop.f32.mrf.mxu2  ;;  %v1151_v53 = vpop.f32.mrf.mxu3 }
  0xbc   :  { %550 = vst [vmem:[#allocation7 + $0x90] sm:$0xff] %v1107_v20 }
  0xbd   :  { %v797_v25 = vadd.f32 %v796_v18, %v734_v22  ;;  %565 = vst [vmem:[#allocation7 + $0x108] sm:$0xff] %v1127_v41 }
  0xbe   :  { %581 = vst [vmem:[#allocation7 + $0x188] sm:$0xff] %v1151_v53 }
  0xc2   :  { %v285_v26 = vpop.f32.mrf.mxu0  ;;  %v1110_v27 = vpop.f32.mrf.mxu1 }
  0xc3   :  { %535 = vst [vmem:[#allocation7 + $0x18] sm:$0xff] %v285_v26  ;;  %v665_v28 = vadd.f32 %v664_v21, %v285_v26  ;;  %v735_v29 = vmul.f32 %v285_v26, %v285_v26  ;;  %v1134_v45 = vpop.f32.mrf.mxu2  ;;  %v1160_v57 = vpop.f32.mrf.mxu3 }
  0xc4   :  { %551 = vst [vmem:[#allocation7 + $0x98] sm:$0xff] %v1110_v27 }
  0xc5   :  { %v798_v31 = vadd.f32 %v797_v25, %v735_v29  ;;  %566 = vst [vmem:[#allocation7 + $0x110] sm:$0xff] %v1134_v45 }
  0xc6   :  { %582 = vst [vmem:[#allocation7 + $0x190] sm:$0xff] %v1160_v57 }
  0xca   :  { %v288_v32 = vpop.f32.mrf.mxu0  ;;  %v1113_v33 = vpop.f32.mrf.mxu1 }
  0xcb   :  { %536 = vst [vmem:[#allocation7 + $0x20] sm:$0xff] %v288_v32  ;;  %v1117_v35 = vadd.f32 %v665_v28, %v288_v32  ;;  %v736_v36 = vmul.f32 %v288_v32, %v288_v32  ;;  %v1140_v48 = vpop.f32.mrf.mxu2  ;;  %v1169_v61 = vpop.f32.mrf.mxu3 }
  0xcc   :  { %552 = vst [vmem:[#allocation7 + $0xa0] sm:$0xff] %v1113_v33 }
  0xcd   :  { %v1120_v38 = vadd.f32 %v798_v31, %v736_v36  ;;  %567 = vst [vmem:[#allocation7 + $0x118] sm:$0xff] %v1140_v48 }
  0xce   :  { %583 = vst [vmem:[#allocation7 + $0x198] sm:$0xff] %v1169_v61 }
  0xd2   :  { %v1123_v39 = vpop.f32.mrf.mxu0  ;;  %v1125_v40 = vpop.f32.mrf.mxu1 }
  0xd3   :  { %537 = vst [vmem:[#allocation7 + $0x28] sm:$0xff] %v1123_v39  ;;  %v1149_v52 = vpop.f32.mrf.mxu2  ;;  %v1178_v1 = vpop.f32.mrf.mxu3  ;;  %v737_v6 = vmul.f32 %v1123_v39, %v1123_v39  ;;  %v667_v9 = vadd.f32 %v1117_v35, %v1123_v39 }
  0xd4   :  { %553 = vst [vmem:[#allocation7 + $0xa8] sm:$0xff] %v1125_v40 }
  0xd5   :  { %568 = vst [vmem:[#allocation7 + $0x120] sm:$0xff] %v1149_v52  ;;  %v800_v10 = vadd.f32 %v1120_v38, %v737_v6 }
  0xd6   :  { %584 = vst [vmem:[#allocation7 + $0x1a0] sm:$0xff] %v1178_v1 }
  0xda   :  { %v294_v43 = vpop.f32.mrf.mxu0  ;;  %v1132_v44 = vpop.f32.mrf.mxu1 }
  0xdb   :  { %538 = vst [vmem:[#allocation7 + $0x30] sm:$0xff] %v294_v43  ;;  %v1158_v56 = vpop.f32.mrf.mxu2  ;;  %v435_v5 = vpop.f32.mrf.mxu3  ;;  %v738_v7 = vmul.f32 %v294_v43, %v294_v43  ;;  %v668_v15 = vadd.f32 %v667_v9, %v294_v43 }
  0xdc   :  { %554 = vst [vmem:[#allocation7 + $0xb0] sm:$0xff] %v1132_v44 }
  0xdd   :  { %569 = vst [vmem:[#allocation7 + $0x128] sm:$0xff] %v1158_v56  ;;  %v801_v18 = vadd.f32 %v800_v10, %v738_v7 }
  0xde   :  { %585 = vst [vmem:[#allocation7 + $0x1a8] sm:$0xff] %v435_v5 }
  0xe2   :  { %v297_v46 = vpop.f32.mrf.mxu0  ;;  %v1138_v47 = vpop.f32.mrf.mxu1 }
  0xe3   :  { %539 = vst [vmem:[#allocation7 + $0x38] sm:$0xff] %v297_v46  ;;  %v1167_v60 = vpop.f32.mrf.mxu2  ;;  %v739_v11 = vmul.f32 %v297_v46, %v297_v46  ;;  %v438_v17 = vpop.f32.mrf.mxu3  ;;  %v669_v21 = vadd.f32 %v668_v15, %v297_v46 }
  0xe4   :  { %555 = vst [vmem:[#allocation7 + $0xb8] sm:$0xff] %v1138_v47 }
  0xe5   :  { %570 = vst [vmem:[#allocation7 + $0x130] sm:$0xff] %v1167_v60  ;;  %v802_v22 = vadd.f32 %v801_v18, %v739_v11 }
  0xe6   :  { %586 = vst [vmem:[#allocation7 + $0x1b0] sm:$0xff] %v438_v17 }
  0xea   :  { %v300_v50 = vpop.f32.mrf.mxu0  ;;  %v1147_v51 = vpop.f32.mrf.mxu1 }
  0xeb   :  { %540 = vst [vmem:[#allocation7 + $0x40] sm:$0xff] %v300_v50  ;;  %v1176_v0 = vpop.f32.mrf.mxu2  ;;  %v740_v19 = vmul.f32 %v300_v50, %v300_v50  ;;  %v670_v24 = vadd.f32 %v669_v21, %v300_v50  ;;  %v441_v37 = vpop.f32.mrf.mxu3  ;;  %v749_v21 = vmul.f32 %v1104_v12, %v1104_v12 }
  0xec   :  { %556 = vst [vmem:[#allocation7 + $0xc0] sm:$0xff] %v1147_v51 }
  0xed   :  { %571 = vst [vmem:[#allocation7 + $0x138] sm:$0xff] %v1176_v0  ;;  %v803_v25 = vadd.f32 %v802_v22, %v740_v19 }
  0xee   :  { %587 = vst [vmem:[#allocation7 + $0x1b8] sm:$0xff] %v441_v37 }
  0xf2   :  { %v303_v54 = vpop.f32.mrf.mxu0  ;;  %v1156_v55 = vpop.f32.mrf.mxu1 }
  0xf3   :  { %541 = vst [vmem:[#allocation7 + $0x48] sm:$0xff] %v303_v54  ;;  %v1185_v4 = vpop.f32.mrf.mxu2  ;;  %v741_v23 = vmul.f32 %v303_v54, %v303_v54  ;;  %v671_v26 = vadd.f32 %v670_v24, %v303_v54  ;;  %v750_v24 = vmul.f32 %v1107_v20, %v1107_v20 }
  0xf4   :  { %557 = vst [vmem:[#allocation7 + $0xc8] sm:$0xff] %v1156_v55 }
  0xf5   :  { %572 = vst [vmem:[#allocation7 + $0x140] sm:$0xff] %v1185_v4  ;;  %v804_v29 = vadd.f32 %v803_v25, %v741_v23 }
  0xfa   :  { %v306_v58 = vpop.f32.mrf.mxu0  ;;  %v1165_v59 = vpop.f32.mrf.mxu1 }
  0xfb   :  { %542 = vst [vmem:[#allocation7 + $0x50] sm:$0xff] %v306_v58  ;;  %v1196_v16 = vpop.f32.mrf.mxu2  ;;  %v742_v28 = vmul.f32 %v306_v58, %v306_v58  ;;  %v672_v32 = vadd.f32 %v671_v26, %v306_v58 }
  0xfc   :  { %558 = vst [vmem:[#allocation7 + $0xd0] sm:$0xff] %v1165_v59 }
  0xfd   :  { %573 = vst [vmem:[#allocation7 + $0x148] sm:$0xff] %v1196_v16  ;;  %v805_v38 = vadd.f32 %v804_v29, %v742_v28 }
 0x102   :  { %v309_v62 = vpop.f32.mrf.mxu0  ;;  %v1174_v63 = vpop.f32.mrf.mxu1 }
 0x103   :  { %543 = vst [vmem:[#allocation7 + $0x58] sm:$0xff] %v309_v62  ;;  %v743_v35 = vmul.f32 %v309_v62, %v309_v62  ;;  %v1202_v36 = vpop.f32.mrf.mxu2  ;;  %v673_v39 = vadd.f32 %v672_v32, %v309_v62  ;;  %v444_v62 = vpop.f32.mrf.mxu3 }
 0x104   :  { %559 = vst [vmem:[#allocation7 + $0xd8] sm:$0xff] %v1174_v63 }
 0x105   :  { %v806_v43 = vadd.f32 %v805_v38, %v743_v35  ;;  %574 = vst [vmem:[#allocation7 + $0x150] sm:$0xff] %v1202_v36 }
 0x106   :  { %588 = vst [vmem:[#allocation7 + $0x1c0] sm:$0xff] %v444_v62  ;;  %v758_v62 = vmul.f32 %v1165_v59, %v1165_v59 }
 0x10a   :  { %v312_v2 = vpop.f32.mrf.mxu0  ;;  %v1183_v3 = vpop.f32.mrf.mxu1 }
 0x10b   :  { %544 = vst [vmem:[#allocation7 + $0x60] sm:$0xff] %v312_v2  ;;  %v744_v42 = vmul.f32 %v312_v2, %v312_v2  ;;  %v674_v46 = vadd.f32 %v673_v39, %v312_v2  ;;  %v1208_v11 = vpop.f32.mrf.mxu2  ;;  %v748_v2 = vmul.f32 %v1101_v8, %v1101_v8  ;;  %v447_v29 = vpop.f32.mrf.mxu3 }
 0x10c   :  { %560 = vst [vmem:[#allocation7 + $0xe0] sm:$0xff] %v1183_v3 }
 0x10d   :  { %v807_v54 = vadd.f32 %v806_v43, %v744_v42  ;;  %575 = vst [vmem:[#allocation7 + $0x158] sm:$0xff] %v1208_v11  ;;  %v754_v42 = vmul.f32 %v1132_v44, %v1132_v44 }
 0x10e   :  { %589 = vst [vmem:[#allocation7 + $0x1c8] sm:$0xff] %v447_v29 }
 0x112   :  { %v315_v13 = vpop.f32.mrf.mxu0  ;;  %v1194_v14 = vpop.f32.mrf.mxu1 }
 0x113   :  { %545 = vst [vmem:[#allocation7 + $0x68] sm:$0xff] %v315_v13  ;;  %v745_v50 = vmul.f32 %v315_v13, %v315_v13  ;;  %v675_v5 = vadd.f32 %v674_v46, %v315_v13  ;;  %v1221_v28 = vpop.f32.mrf.mxu2 }
 0x114   :  { %561 = vst [vmem:[#allocation7 + $0xe8] sm:$0xff] %v1194_v14 }
 0x115   :  { %v808_v9 = vadd.f32 %v807_v54, %v745_v50  ;;  %576 = vst [vmem:[#allocation7 + $0x160] sm:$0xff] %v1221_v28  ;;  %v450_v50 = vpop.f32.mrf.mxu3 }
 0x116   :  { %590 = vst [vmem:[#allocation7 + $0x1d0] sm:$0xff] %v450_v50 }
 0x11a   :  { %v318_v30 = vpop.f32.mrf.mxu0  ;;  %v1200_v31 = vpop.f32.mrf.mxu1 }
 0x11b   :  { %546 = vst [vmem:[#allocation7 + $0x70] sm:$0xff] %v318_v30  ;;  %v746_v6 = vmul.f32 %v318_v30, %v318_v30  ;;  %v676_v10 = vadd.f32 %v675_v5, %v318_v30  ;;  %v1236_v46 = vpop.f32.mrf.mxu2 }
 0x11c   :  { %562 = vst [vmem:[#allocation7 + $0xf0] sm:$0xff] %v1200_v31 }
 0x11d   :  { %v809_v15 = vadd.f32 %v808_v9, %v746_v6  ;;  %577 = vst [vmem:[#allocation7 + $0x168] sm:$0xff] %v1236_v46 }
 0x122   :  { %v321_v58 = vpop.f32.mrf.mxu0  ;;  %v1206_v7 = vpop.f32.mrf.mxu1 }
 0x123   :  { %547 = vst [vmem:[#allocation7 + $0x78] sm:$0xff] %v321_v58  ;;  %v677_v17 = vadd.f32 %v676_v10, %v321_v58  ;;  %v747_v18 = vmul.f32 %v321_v58, %v321_v58 }
 0x124   :  { %563 = vst [vmem:[#allocation7 + $0xf8] sm:$0xff] %v1206_v7 }
 0x125   :  { %v678_v13 = vadd.f32 %v677_v17, %v1101_v8  ;;  %v810_v19 = vadd.f32 %v809_v15, %v747_v18  ;;  %v751_v8 = vmul.f32 %v1110_v27, %v1110_v27  ;;  %v1251_v17 = vpop.f32.mrf.mxu2  ;;  %v453_v18 = vpop.f32.mrf.mxu3 }
 0x126   :  { %578 = vst [vmem:[#allocation7 + $0x170] sm:$0xff] %v1251_v17 }
 0x127   :  { %v679_v22 = vadd.f32 %v678_v13, %v1104_v12  ;;  %v811_v23 = vadd.f32 %v810_v19, %v748_v2  ;;  %v752_v12 = vmul.f32 %v1113_v33, %v1113_v33  ;;  %591 = vst [vmem:[#allocation7 + $0x1d8] sm:$0xff] %v453_v18 }
 0x129   :  { %v680_v25 = vadd.f32 %v679_v22, %v1107_v20  ;;  %v812_v26 = vadd.f32 %v811_v23, %v749_v21  ;;  %v753_v20 = vmul.f32 %v1125_v40, %v1125_v40  ;;  %v760_v21 = vmul.f32 %v1183_v3, %v1183_v3 }
 0x12a   :  { %v761_v23 = vmul.f32 %v1194_v14, %v1194_v14 }
 0x12b   :  { %v681_v30 = vadd.f32 %v680_v25, %v1110_v27  ;;  %v813_v32 = vadd.f32 %v812_v26, %v750_v24  ;;  %v763_v26 = vmul.f32 %v1206_v7, %v1206_v7 }
 0x12d   :  { %v682_v35 = vadd.f32 %v681_v30, %v1113_v33  ;;  %v814_v37 = vadd.f32 %v813_v32, %v751_v8  ;;  %v755_v33 = vmul.f32 %v1138_v47, %v1138_v47  ;;  %v1268_v29 = vpop.f32.mrf.mxu2  ;;  %v456_v8 = vpop.f32.mrf.mxu3 }
 0x12e   :  { %579 = vst [vmem:[#allocation7 + $0x178] sm:$0xff] %v1268_v29 }
 0x12f   :  { %v815_v38 = vadd.f32 %v814_v37, %v752_v12  ;;  %v683_v39 = vadd.f32 %v682_v35, %v1125_v40  ;;  %v756_v40 = vmul.f32 %v1147_v51, %v1147_v51  ;;  %592 = vst [vmem:[#allocation7 + $0x1e0] sm:$0xff] %v456_v8 }
 0x131   :  { %v684_v27 = vadd.f32 %v683_v39, %v1132_v44  ;;  %v816_v43 = vadd.f32 %v815_v38, %v753_v20  ;;  %v757_v44 = vmul.f32 %v1156_v55, %v1156_v55  ;;  %v766_v20 = vmul.f32 %v1134_v45, %v1134_v45 }
 0x133   :  { %v685_v54 = vadd.f32 %v684_v27, %v1138_v47  ;;  %v817_v5 = vadd.f32 %v816_v43, %v754_v42  ;;  %v767_v42 = vmul.f32 %v1140_v48, %v1140_v48  ;;  %v768_v43 = vmul.f32 %v1149_v52, %v1149_v52 }
 0x135   :  { %v686_v6 = vadd.f32 %v685_v54, %v1147_v51  ;;  %v818_v58 = vadd.f32 %v817_v5, %v755_v33  ;;  %v759_v51 = vmul.f32 %v1174_v63, %v1174_v63  ;;  %v459_v39 = vpop.f32.mrf.mxu3  ;;  %v769_v33 = vmul.f32 %v1158_v56, %v1158_v56 }
 0x136   :  { %593 = vst [vmem:[#allocation7 + $0x1e8] sm:$0xff] %v459_v39  ;;  %v770_v5 = vmul.f32 %v1167_v60, %v1167_v60 }
 0x137   :  { %v687_v9 = vadd.f32 %v686_v6, %v1156_v55  ;;  %v819_v10 = vadd.f32 %v818_v58, %v756_v40  ;;  %v771_v58 = vmul.f32 %v1176_v0, %v1176_v0 }
 0x139   :  { %v688_v47 = vadd.f32 %v687_v9, %v1165_v59  ;;  %v820_v15 = vadd.f32 %v819_v10, %v757_v44  ;;  %v772_v9 = vmul.f32 %v1185_v4, %v1185_v4 }
 0x13b   :  { %v689_v2 = vadd.f32 %v688_v47, %v1174_v63  ;;  %v821_v13 = vadd.f32 %v820_v15, %v758_v62  ;;  %v762_v63 = vmul.f32 %v1200_v31, %v1200_v31  ;;  %v773_v62 = vmul.f32 %v1196_v16, %v1196_v16 }
 0x13d   :  { %v822_v19 = vadd.f32 %v821_v13, %v759_v51  ;;  %v690_v55 = vadd.f32 %v689_v2, %v1183_v3  ;;  %v462_v6 = vpop.f32.mrf.mxu3 }
 0x13e   :  { %594 = vst [vmem:[#allocation7 + $0x1f0] sm:$0xff] %v462_v6 }
 0x13f   :  { %v823_v59 = vadd.f32 %v822_v19, %v760_v21  ;;  %v691_v22 = vadd.f32 %v690_v55, %v1194_v14  ;;  %v764_v14 = vmul.f32 %v1115_v34, %v1115_v34  ;;  %v776_v55 = vmul.f32 %v1221_v28, %v1221_v28 }
 0x141   :  { %v824_v24 = vadd.f32 %v823_v59, %v761_v23  ;;  %v692_v25 = vadd.f32 %v691_v22, %v1200_v31  ;;  %v765_v31 = vmul.f32 %v1127_v41, %v1127_v41  ;;  %v777_v59 = vmul.f32 %v1236_v46, %v1236_v46 }
 0x142   :  { %v778_v23 = vmul.f32 %v1251_v17, %v1251_v17 }
 0x143   :  { %v825_v3 = vadd.f32 %v824_v24, %v762_v63  ;;  %v693_v30 = vadd.f32 %v692_v25, %v1206_v7  ;;  %v779_v24 = vmul.f32 %v1268_v29, %v1268_v29  ;;  %v780_v63 = vmul.f32 %v1142_v49, %v1142_v49 }
 0x145   :  { %v694_v32 = vadd.f32 %v693_v30, %v1115_v34  ;;  %v826_v12 = vadd.f32 %v825_v3, %v763_v26 }
 0x147   :  { %v695_v35 = vadd.f32 %v694_v32, %v1127_v41  ;;  %v827_v37 = vadd.f32 %v826_v12, %v764_v14 }
 0x149   :  { %v696_v7 = vadd.f32 %v695_v35, %v1134_v45  ;;  %v828_v38 = vadd.f32 %v827_v37, %v765_v31  ;;  %v784_v35 = vmul.f32 %v1178_v1, %v1178_v1 }
 0x14b   :  { %v697_v34 = vadd.f32 %v696_v7, %v1140_v48  ;;  %v829_v27 = vadd.f32 %v828_v38, %v766_v20  ;;  %v653_v20 = vld [vmem:[#allocation7 + $0x1b0] sm:$0xff] }
 0x14d   :  { %v698_v41 = vadd.f32 %v697_v34, %v1149_v52  ;;  %v830_v50 = vadd.f32 %v829_v27, %v767_v42  ;;  %v654_v42 = vld [vmem:[#allocation7 + $0x1b8] sm:$0xff]  ;;  %v786_v34 = vmul.f32 %v653_v20, %v653_v20 }
 0x14f   :  { %v831_v54 = vadd.f32 %v830_v50, %v768_v43  ;;  %v699_v45 = vadd.f32 %v698_v41, %v1158_v56  ;;  %v655_v43 = vld [vmem:[#allocation7 + $0x1c0] sm:$0xff]  ;;  %v787_v50 = vmul.f32 %v654_v42, %v654_v42 }
 0x151   :  { %v700_v40 = vadd.f32 %v699_v45, %v1167_v60  ;;  %v832_v48 = vadd.f32 %v831_v54, %v769_v33  ;;  %v656_v33 = vld [vmem:[#allocation7 + $0x1c8] sm:$0xff]  ;;  %v788_v45 = vmul.f32 %v655_v43, %v655_v43 }
 0x153   :  { %v701_v44 = vadd.f32 %v700_v40, %v1176_v0  ;;  %v833_v52 = vadd.f32 %v832_v48, %v770_v5  ;;  %v774_v0 = vmul.f32 %v1202_v36, %v1202_v36  ;;  %v657_v40 = vld [vmem:[#allocation7 + $0x1d0] sm:$0xff] }
 0x155   :  { %v702_v10 = vadd.f32 %v701_v44, %v1185_v4  ;;  %v834_v56 = vadd.f32 %v833_v52, %v771_v58  ;;  %v465_v4 = vpop.f32.mrf.mxu3  ;;  %v658_v58 = vld [vmem:[#allocation7 + $0x1d8] sm:$0xff]  ;;  %v790_v52 = vmul.f32 %v657_v40, %v657_v40 }
 0x156   :  { %595 = vst [vmem:[#allocation7 + $0x1f8] sm:$0xff] %v465_v4  ;;  %v661_v4 = vld [vmem:[#allocation7 + $0x1f0] sm:$0xff] }
 0x157   :  { %v703_v60 = vadd.f32 %v702_v10, %v1196_v16  ;;  %v835_v47 = vadd.f32 %v834_v56, %v772_v9  ;;  %v775_v16 = vmul.f32 %v1208_v11, %v1208_v11  ;;  %880 = dma.vmem_to_hbm [thread:$0]  %s873_s1, 8192, %s875_s26, [#allocation4], %s1064_s20, %s1064_s20, %s1065_s21   ;;  %v659_v10 = vld [vmem:[#allocation7 + $0x1e0] sm:$0xff] }
 0x159   :  { %v704_v15 = vadd.f32 %v703_v60, %v1202_v36  ;;  %v836_v18 = vadd.f32 %v835_v47, %v773_v62  ;;  %v791_v62 = vmul.f32 %v658_v58, %v658_v58  ;;  %v660_v47 = vld [vmem:[#allocation7 + $0x1e8] sm:$0xff] }
 0x15b   :  { %v705_v2 = vadd.f32 %v704_v15, %v1208_v11  ;;  %v837_v51 = vadd.f32 %v836_v18, %v774_v0  ;;  %v792_v15 = vmul.f32 %v659_v10, %v659_v10 }
 0x15d   :  { %v838_v13 = vadd.f32 %v837_v51, %v775_v16  ;;  %v706_v19 = vadd.f32 %v705_v2, %v1221_v28  ;;  %v662_v2 = vld [vmem:[#allocation7 + $0x1f8] sm:$0xff]  ;;  %v793_v51 = vmul.f32 %v660_v47, %v660_v47 }
 0x15f   :  { %v839_v36 = vadd.f32 %v838_v13, %v776_v55  ;;  %v707_v21 = vadd.f32 %v706_v19, %v1236_v46  ;;  %v781_v46 = vmul.f32 %v1151_v53, %v1151_v53  ;;  %v794_v55 = vmul.f32 %v661_v4, %v661_v4 }
 0x161   :  { %v840_v22 = vadd.f32 %v839_v36, %v777_v59  ;;  %v708_v11 = vadd.f32 %v707_v21, %v1251_v17  ;;  %v782_v17 = vmul.f32 %v1160_v57, %v1160_v57  ;;  %v795_v36 = vmul.f32 %v662_v2, %v662_v2 }
 0x163   :  { %v841_v28 = vadd.f32 %v840_v22, %v778_v23  ;;  %v709_v25 = vadd.f32 %v708_v11, %v1268_v29  ;;  %v783_v29 = vmul.f32 %v1169_v61, %v1169_v61 }
 0x165   :  { %v710_v26 = vadd.f32 %v709_v25, %v1142_v49  ;;  %v842_v8 = vadd.f32 %v841_v28, %v779_v24  ;;  %v652_v49 = vld [vmem:[#allocation7 + $0x1a8] sm:$0xff] }
 0x166   :  { %v785_v38 = vmul.f32 %v652_v49, %v652_v49 }
 0x167   :  { %v711_v3 = vadd.f32 %v710_v26, %v1151_v53  ;;  %v843_v30 = vadd.f32 %v842_v8, %v780_v63 }
 0x169   :  { %v712_v14 = vadd.f32 %v711_v3, %v1160_v57  ;;  %v844_v32 = vadd.f32 %v843_v30, %v781_v46 }
 0x16b   :  { %v713_v12 = vadd.f32 %v712_v14, %v1169_v61  ;;  %v845_v31 = vadd.f32 %v844_v32, %v782_v17 }
 0x16d   :  { %v714_v37 = vadd.f32 %v713_v12, %v1178_v1  ;;  %v846_v53 = vadd.f32 %v845_v31, %v783_v29  ;;  %v789_v1 = vmul.f32 %v656_v33, %v656_v33 }
 0x16f   :  { %v715_v7 = vadd.f32 %v714_v37, %v652_v49  ;;  %v847_v39 = vadd.f32 %v846_v53, %v784_v35 }
 0x171   :  { %v716_v57 = vadd.f32 %v715_v7, %v653_v20  ;;  %v848_v27 = vadd.f32 %v847_v39, %v785_v38 }
 0x173   :  { %v717_v41 = vadd.f32 %v716_v57, %v654_v42  ;;  %v849_v61 = vadd.f32 %v848_v27, %v786_v34 }
 0x175   :  { %v718_v54 = vadd.f32 %v717_v41, %v655_v43  ;;  %v850_v5 = vadd.f32 %v849_v61, %v787_v50 }
 0x177   :  { %v719_v48 = vadd.f32 %v718_v54, %v656_v33  ;;  %v851_v6 = vadd.f32 %v850_v5, %v788_v45 }
 0x179   :  { %v720_v44 = vadd.f32 %v719_v48, %v657_v40  ;;  %v852_v9 = vadd.f32 %v851_v6, %v789_v1 }
 0x17b   :  { %v721_v56 = vadd.f32 %v720_v44, %v658_v58  ;;  %v853_v60 = vadd.f32 %v852_v9, %v790_v52 }
 0x17d   :  { %v722_v0 = vadd.f32 %v721_v56, %v659_v10  ;;  %v854_v18 = vadd.f32 %v853_v60, %v791_v62 }
 0x17f   :  { %v723_v16 = vadd.f32 %v722_v0, %v660_v47  ;;  %v855_v13 = vadd.f32 %v854_v18, %v792_v15 }
 0x181   :  { %v724_v19 = vadd.f32 %v723_v16, %v661_v4  ;;  %v856_v21 = vadd.f32 %v855_v13, %v793_v51 }
 0x183   :  { %v725_v59 = vadd.f32 %v724_v19, %v662_v2  ;;  %v857_v22 = vadd.f32 %v856_v21, %v794_v55 }
 0x185   :  { %v726_v11 = vrot.slane %v725_v59, 4  ;;  %v858_v23 = vadd.f32 %v857_v22, %v795_v36 }
 0x187   :  { %v727_v24 = vadd.f32 %v726_v11, %v725_v59  ;;  %v859_v28 = vrot.slane %v858_v23, 4 }
 0x189   :  { %v728_v25 = vrot.slane %v727_v24, 2  ;;  %v860_v63 = vadd.f32 %v859_v28, %v858_v23 }
 0x18b   :  { %v729_v26 = vadd.f32 %v728_v25, %v727_v24  ;;  %v861_v8 = vrot.slane %v860_v63, 2 }
 0x18d   :  { %v730_v46 = vrot.slane %v729_v26, 1  ;;  %v862_v3 = vadd.f32 %v861_v8, %v860_v63 }
 0x18f   :  { %v863_v30 = vrot.slane %v862_v3, 1  ;;  %v731_v17 = vadd.f32 %v730_v46, %v729_v26 }
 0x191   :  { %v864_v14 = vadd.f32 %v863_v30, %v862_v3 }
 0x193   :  { %v866_v32 = vsel %vm865_vm0, %v731_v17, %v864_v14 }
 0x194   :  { %867 = vst [vmem:[#allocation8] sm:$0x3] %v866_v32 }
 0x195   :  { %891 = dma.vmem_to_hbm [thread:$0]  %s887_s27, 32, %s889_s30, [#allocation9]  }
 0x196   :  { %1059 = dma.done.wait [#allocation4], 8192  }
 0x197   :  { %1060 = vsyncadd [#allocation4], 4294959104 }
 0x198   :  { %1061 = dma.done.wait [#allocation9], 32  }
 0x199   :  { %1062 = vsyncadd [#allocation9], 4294967264 }
 0x19a   :  { %900 = vsyncpa [#allocation3], 1 }
 0x19b   :  { %901 = vsyncpa [#allocation6], 1 }
 0x19c   :  { %902 = vsyncpa [#allocation4], 1 }
 0x19d   :  { %903 = vsyncpa [#allocation9], 1 }

</bundles_post_ra>
